<compile_context>
chip_gen: v7x
topology: tpu7x:2x2x1
jax: 0.10.0
libtpu: 0.0.40
codegen_flags: <defaults>
</compile_context>

<pallas_src>
import jax
import jax.numpy as jnp
from jax.experimental import pallas as pl
from jax.experimental.pallas import tpu as pltpu

IN_FEATURES = 5
OUT_FEATURES = 5           # layout trick below assumes IN_FEATURES == OUT_FEATURES
_LANE = 128                # samples per interleaved 640-lane row
_GROUP = _LANE * IN_FEATURES          # 640 lanes per row (multiple of 128)
_MAX_TILE_ROWS = 2048      # rows per grid step: 2048*640*4 B = 5 MiB per block
_VMEM_LIMIT = 28 * 1024 * 1024        # fits 2x(in+out) buffers on every generation


def _round_up(n, m):
    return ((n + m - 1) // m) * m


def _choose_tile_rows(n_rows):
    if n_rows <= 8:
        return n_rows                  # single full block (block dim == array dim)
    # Aim for >= 4 grid steps (v7x megacore + pipelining), rows a multiple of 8
    # (sublane tile), capped so double-buffered in+out stay well inside VMEM.
    target = _round_up(-(-n_rows // 4), 8)
    return max(8, min(_MAX_TILE_ROWS, target))


def _linear_kernel(x_ref, coef_ref, bias_ref, o_ref):
    # x_ref:    (tile_rows, 640) VMEM -- 128 samples/row, 5 features interleaved
    # coef_ref: (9, 640)         VMEM -- shift-aligned weight rows for d = -4..4
    # bias_ref: (1, 640)         VMEM -- bias replicated per lane: b[lane % 5]
    # o_ref:    (tile_rows, 640) VMEM -- same interleaved layout as the input
    x = x_ref[...]
    nd = IN_FEATURES - 1                                    # 4
    acc = bias_ref[0:1, :] + x * coef_ref[nd:nd + 1, :]     # d = 0 term (no roll)
    for d in range(-nd, nd + 1):                            # fully unrolled
        if d == 0:
            continue
        # Output lane j needs the input value at lane j + d (same 5-sample
        # group; coefficients are zero wherever j + d would leave the group,
        # so the rotate wrap-around never contributes).
        x_d = pltpu.roll(x, shift=(-d) % _GROUP, axis=1)    # XLU lane rotation
        acc = acc + x_d * coef_ref[nd + d:nd + d + 1, :]    # VPU MAC
    o_ref[...] = acc.astype(o_ref.dtype)                    # dense, unmasked store


def torch_model_forward(x, w, b):
    """Forward pass equivalent to TorchModel.forward (torch.nn.Linear(5, 5)).

    x: (in_features,) or (batch, in_features) float32
    w: (out_features, in_features) float32   (PyTorch layout)
    b: (out_features,) float32
    returns (batch, out_features) float32 (1-D input -> (1, out), matching the
    module's explicit unsqueeze(0)).
    """
    if x.ndim == 1:
        x = x[None, :]                         # same as x.unsqueeze(0)
    batch = x.shape[0]
    x32 = x.astype(jnp.float32)
    w32 = w.astype(jnp.float32)
    b32 = b.astype(jnp.float32)

    # --- batch padding / tiling (single pad only when batch is unaligned) ---
    n_rows = -(-batch // _LANE)                # cdiv(batch, 128)
    tile_rows = _choose_tile_rows(n_rows)
    grid_steps = -(-n_rows // tile_rows)
    n_rows_pad = grid_steps * tile_rows
    b_pad = n_rows_pad * _LANE
    if b_pad != batch:
        x32 = jnp.pad(x32, ((0, b_pad - batch), (0, 0)))
    # Free, contiguous reshape: lane j of a row = feature (j % 5) of sample (j // 5).
    x_il = x32.reshape(n_rows_pad, _GROUP)

    # --- tiny shift-aligned coefficient rows + lane-replicated bias ----------
    lane = jnp.arange(_GROUP)
    o_of_lane = lane % OUT_FEATURES                                  # (640,)
    d_vals = jnp.arange(-(IN_FEATURES - 1), IN_FEATURES)             # (9,)
    i_of_lane = o_of_lane[None, :] + d_vals[:, None]                 # (9, 640)
    valid = (i_of_lane >= 0) & (i_of_lane < IN_FEATURES)
    coef = jnp.where(
        valid,
        w32[jnp.broadcast_to(o_of_lane[None, :], i_of_lane.shape),
            jnp.clip(i_of_lane, 0, IN_FEATURES - 1)],
        jnp.float32(0.0),
    )                                                                # (9, 640)
    bias_lane = b32[o_of_lane][None, :]                              # (1, 640)

    y_il = pl.pallas_call(
        _linear_kernel,
        out_shape=jax.ShapeDtypeStruct((n_rows_pad, _GROUP), jnp.float32),
        grid=(grid_steps,),
        in_specs=[
            pl.BlockSpec((tile_rows, _GROUP), lambda i: (i, 0)),         # x tiles
            pl.BlockSpec((2 * IN_FEATURES - 1, _GROUP), lambda i: (0, 0)),  # coef
            pl.BlockSpec((1, _GROUP), lambda i: (0, 0)),                 # bias
        ],
        out_specs=pl.BlockSpec((tile_rows, _GROUP), lambda i: (i, 0)),
        compiler_params=pltpu.CompilerParams(
            dimension_semantics=("parallel",),     # megacore sharding on v7x
            vmem_limit_bytes=_VMEM_LIMIT,
        ),
    )(x_il, coef, bias_lane)

    # Free reshape back to (batch, out_features); drop batch padding.
    return y_il.reshape(b_pad, OUT_FEATURES)[:batch]


if __name__ == "__main__":
    key = jax.random.PRNGKey(0)
    kx, kw, kb, kx2 = jax.random.split(key, 4)

    # Deterministic synthetic parameters (shapes from nn.Linear(5, 5)).
    bound = 1.0 / (IN_FEATURES ** 0.5)
    w = jax.random.uniform(kw, (OUT_FEATURES, IN_FEATURES),
                           minval=-bound, maxval=bound, dtype=jnp.float32)
    b = jax.random.uniform(kb, (OUT_FEATURES,),
                           minval=-bound, maxval=bound, dtype=jnp.float32)

    # Small batched input (batch=8, in_features=5).
    x = jax.random.normal(kx, (8, IN_FEATURES), dtype=jnp.float32)
    y = jax.block_until_ready(torch_model_forward(x, w, b))
    y_ref = x @ w.T + b
    assert y.shape == (8, OUT_FEATURES)
    assert jnp.allclose(y, y_ref, atol=1e-5), "batched mismatch vs reference"

    # 1-D input branch (unsqueeze(0); output stays (1, OUT) like the module).
    y1 = jax.block_until_ready(torch_model_forward(x[0], w, b))
    assert y1.shape == (1, OUT_FEATURES)
    assert jnp.allclose(y1, y_ref[0:1], atol=1e-5), "1-D mismatch vs reference"

    # Larger batch exercising padding + the multi-step, pipelined, parallel grid.
    x_big = jax.random.normal(kx2, (2500, IN_FEATURES), dtype=jnp.float32)
    y_big = jax.block_until_ready(torch_model_forward(x_big, w, b))
    assert y_big.shape == (2500, OUT_FEATURES)
    assert jnp.allclose(y_big, x_big @ w.T + b, atol=1e-5), "multi-tile mismatch"

    print("KERNEL_OK")
</pallas_src>

<mosaic_0001>
module attributes {stable_mosaic.version = 11 : i64} {
  func.func @_linear_kernel(%arg0: i32, %arg1: memref<1x640xf32, #tpu.memory_space<vmem>>, %arg2: memref<9x640xf32, #tpu.memory_space<vmem>>, %arg3: memref<1x640xf32, #tpu.memory_space<vmem>>, %arg4: memref<1x640xf32, #tpu.memory_space<vmem>>) attributes {dimension_semantics = [#tpu.dimension_semantics<parallel>], iteration_bounds = array<i64: 1>, scalar_prefetch = 0 : i64, scratch_operands = 0 : i64, tpu.core_type = #tpu.core_type<tc>, window_params = [{transform_indices = @transform_0, window_bounds = array<i64: 1, 640>}, {pipeline_mode = #tpu.pipeline_mode<synchronous>, transform_indices = @transform_1, window_bounds = array<i64: 9, 640>}, {pipeline_mode = #tpu.pipeline_mode<synchronous>, transform_indices = @transform_2, window_bounds = array<i64: 1, 640>}, {transform_indices = @transform_3, window_bounds = array<i64: 1, 640>}]} {
    %c0 = arith.constant 0 : index
    %c0_0 = arith.constant 0 : index
    %0 = vector.load %arg1[%c0, %c0_0] : memref<1x640xf32, #tpu.memory_space<vmem>>, vector<1x640xf32>
    %c0_1 = arith.constant 0 : index
    %c0_2 = arith.constant 0 : index
    %1 = vector.load %arg3[%c0_1, %c0_2] : memref<1x640xf32, #tpu.memory_space<vmem>>, vector<1x640xf32>
    %c4 = arith.constant 4 : index
    %c0_3 = arith.constant 0 : index
    %2 = vector.load %arg2[%c4, %c0_3] : memref<9x640xf32, #tpu.memory_space<vmem>>, vector<1x640xf32>
    %3 = arith.mulf %0, %2 : vector<1x640xf32>
    %4 = arith.addf %1, %3 : vector<1x640xf32>
    %c4_i32 = arith.constant 4 : i32
    %5 = tpu.dynamic_rotate %0 by %c4_i32 dim 1 : vector<1x640xf32>, i32 -> vector<1x640xf32>
    %c0_4 = arith.constant 0 : index
    %c0_5 = arith.constant 0 : index
    %6 = vector.load %arg2[%c0_4, %c0_5] : memref<9x640xf32, #tpu.memory_space<vmem>>, vector<1x640xf32>
    %7 = arith.mulf %5, %6 : vector<1x640xf32>
    %8 = arith.addf %4, %7 : vector<1x640xf32>
    %c3_i32 = arith.constant 3 : i32
    %9 = tpu.dynamic_rotate %0 by %c3_i32 dim 1 : vector<1x640xf32>, i32 -> vector<1x640xf32>
    %c1 = arith.constant 1 : index
    %c0_6 = arith.constant 0 : index
    %10 = vector.load %arg2[%c1, %c0_6] : memref<9x640xf32, #tpu.memory_space<vmem>>, vector<1x640xf32>
    %11 = arith.mulf %9, %10 : vector<1x640xf32>
    %12 = arith.addf %8, %11 : vector<1x640xf32>
    %c2_i32 = arith.constant 2 : i32
    %13 = tpu.dynamic_rotate %0 by %c2_i32 dim 1 : vector<1x640xf32>, i32 -> vector<1x640xf32>
    %c2 = arith.constant 2 : index
    %c0_7 = arith.constant 0 : index
    %14 = vector.load %arg2[%c2, %c0_7] : memref<9x640xf32, #tpu.memory_space<vmem>>, vector<1x640xf32>
    %15 = arith.mulf %13, %14 : vector<1x640xf32>
    %16 = arith.addf %12, %15 : vector<1x640xf32>
    %c1_i32 = arith.constant 1 : i32
    %17 = tpu.dynamic_rotate %0 by %c1_i32 dim 1 : vector<1x640xf32>, i32 -> vector<1x640xf32>
    %c3 = arith.constant 3 : index
    %c0_8 = arith.constant 0 : index
    %18 = vector.load %arg2[%c3, %c0_8] : memref<9x640xf32, #tpu.memory_space<vmem>>, vector<1x640xf32>
    %19 = arith.mulf %17, %18 : vector<1x640xf32>
    %20 = arith.addf %16, %19 : vector<1x640xf32>
    %c639_i32 = arith.constant 639 : i32
    %21 = tpu.dynamic_rotate %0 by %c639_i32 dim 1 : vector<1x640xf32>, i32 -> vector<1x640xf32>
    %c5 = arith.constant 5 : index
    %c0_9 = arith.constant 0 : index
    %22 = vector.load %arg2[%c5, %c0_9] : memref<9x640xf32, #tpu.memory_space<vmem>>, vector<1x640xf32>
    %23 = arith.mulf %21, %22 : vector<1x640xf32>
    %24 = arith.addf %20, %23 : vector<1x640xf32>
    %c638_i32 = arith.constant 638 : i32
    %25 = tpu.dynamic_rotate %0 by %c638_i32 dim 1 : vector<1x640xf32>, i32 -> vector<1x640xf32>
    %c6 = arith.constant 6 : index
    %c0_10 = arith.constant 0 : index
    %26 = vector.load %arg2[%c6, %c0_10] : memref<9x640xf32, #tpu.memory_space<vmem>>, vector<1x640xf32>
    %27 = arith.mulf %25, %26 : vector<1x640xf32>
    %28 = arith.addf %24, %27 : vector<1x640xf32>
    %c637_i32 = arith.constant 637 : i32
    %29 = tpu.dynamic_rotate %0 by %c637_i32 dim 1 : vector<1x640xf32>, i32 -> vector<1x640xf32>
    %c7 = arith.constant 7 : index
    %c0_11 = arith.constant 0 : index
    %30 = vector.load %arg2[%c7, %c0_11] : memref<9x640xf32, #tpu.memory_space<vmem>>, vector<1x640xf32>
    %31 = arith.mulf %29, %30 : vector<1x640xf32>
    %32 = arith.addf %28, %31 : vector<1x640xf32>
    %c636_i32 = arith.constant 636 : i32
    %33 = tpu.dynamic_rotate %0 by %c636_i32 dim 1 : vector<1x640xf32>, i32 -> vector<1x640xf32>
    %c8 = arith.constant 8 : index
    %c0_12 = arith.constant 0 : index
    %34 = vector.load %arg2[%c8, %c0_12] : memref<9x640xf32, #tpu.memory_space<vmem>>, vector<1x640xf32>
    %35 = arith.mulf %33, %34 : vector<1x640xf32>
    %36 = arith.addf %32, %35 : vector<1x640xf32>
    %c0_13 = arith.constant 0 : index
    %c0_14 = arith.constant 0 : index
    %37 = vector.load %arg4[%c0_13, %c0_14] : memref<1x640xf32, #tpu.memory_space<vmem>>, vector<1x640xf32>
    tpu.vector_store %arg4[%c0_13, %c0_14], %36 {strides = array<i32>} : memref<1x640xf32, #tpu.memory_space<vmem>>, vector<1x640xf32>,
    return
  }
  func.func @transform_0(%arg0: i32) -> (i32, i32) {
    %c0_i32 = arith.constant 0 : i32
    %c0_i32_0 = arith.constant 0 : i32
    return %arg0, %c0_i32 : i32, i32
  }
  func.func @transform_1(%arg0: i32) -> (i32, i32) {
    %c0_i32 = arith.constant 0 : i32
    %c0_i32_0 = arith.constant 0 : i32
    %c0_i32_1 = arith.constant 0 : i32
    return %c0_i32, %c0_i32_0 : i32, i32
  }
  func.func @transform_2(%arg0: i32) -> (i32, i32) {
    %c0_i32 = arith.constant 0 : i32
    %c0_i32_0 = arith.constant 0 : i32
    %c0_i32_1 = arith.constant 0 : i32
    return %c0_i32, %c0_i32_0 : i32, i32
  }
  func.func @transform_3(%arg0: i32) -> (i32, i32) {
    %c0_i32 = arith.constant 0 : i32
    %c0_i32_0 = arith.constant 0 : i32
    return %arg0, %c0_i32 : i32, i32
  }
}

</mosaic_0001>

<bundles_post_ra>
// kernel: tpu_custom_call.1
= control target key start
LH: loop header
LB: loop body
LE: loop exit
PB: predicated region body
PF: predicated region fallthrough
CT: control target
= control target key end

     0   :  { %8 = vsyncpa [#allocation3], 0  ;;  %s1245_s0 = inlined_call_operand.hbm [shape: f32[1,640], index: 0, kind: input, shape index: {}]   ;;  %s1246_s1 = inlined_call_operand.hbm [shape: f32[9,640], index: 1, kind: input, shape index: {}]   ;;  %s1247_s2 = inlined_call_operand.vmem [shape: f32[1,640], index: 2, kind: input, shape index: {}]   ;;  %s1248_s3 = inlined_call_operand.hbm [shape: f32[1,640], index: 3, kind: output, shape index: {}]  }
   0x1   :  { %9 = vsyncpa [#allocation6], 0 }
   0x2   :  { %10 = vsyncpa [#allocation4], 0  ;;  %s959_s12 = smov [#allocation2]   ;;  %s960_s14 = smov [#allocation5]  }
   0x3   :  { %s17_s13 = sshll.u32 %s959_s12, 4  ;;  %s26_s15 = sshll.u32 %s960_s14, 4  ;;  %s18_s13 = int_to_ptr.vmem [resolvable:$true] %s17_s13  ;;  %s993_s15 = int_to_ptr.vmem [resolvable:$true] %s26_s15 }
   0x4   :  { %s887_s18 = scalar_lea.hbm %s1245_s0, 80 }
   0x5   :  { %p888_p0 = scmp.ne.s32.totalorder %s1245_s0, %s887_s18  ;;  %p891_p1 = scmp.lt.u32.totalorder %s887_s18, %s1245_s0 }
   0x7   :  { %p893_p2 = pnand %p891_p1, %p888_p0 }
   0x9   :  { %896 = shalt.err (!%p893_p2)
}
   0xa   :  { %s897_s23 = scalar_lea.vmem %s18_s13, 80  ;;  %s901_s24 = scalar_lea.vmem %s18_s13, 96 }
   0xb   :  { %p898_p3 = scmp.ne.s32.totalorder %s18_s13, %s897_s23  ;;  %p902_p4 = scmp.lt.s32.totalorder %s18_s13, %s18_s13 }
   0xc   :  { %p903_p5 = scmp.lt.s32.totalorder %s901_s24, %s897_s23 }
   0xe   :  { %p904_p6 = por %p903_p5, %p902_p4 }
  0x10   :  { %p905_p7 = pnand %p904_p6, %p898_p3 }
  0x12   :  { %908 = shalt.err (!%p905_p7)
}
  0x13   :  { %20 = dma.hbm_to_vmem [thread:$0]  %s1245_s0, 80, %s18_s13, [#allocation3]  }
  0x14   :  { %s909_s29 = scalar_lea.hbm %s1246_s1, 1280 }
  0x15   :  { %p910_p8 = scmp.ne.s32.totalorder %s1246_s1, %s909_s29  ;;  %p913_p9 = scmp.lt.u32.totalorder %s909_s29, %s1246_s1 }
  0x17   :  { %p915_p10 = pnand %p913_p9, %p910_p8 }
  0x19   :  { %918 = shalt.err (!%p915_p10)
}
  0x1a   :  { %s919_s7 = scalar_lea.vmem %s993_s15, 1280  ;;  %p924_p12 = scmp.lt.s32.totalorder %s993_s15, %s993_s15 }
  0x1b   :  { %p920_p11 = scmp.ne.s32.totalorder %s993_s15, %s919_s7  ;;  %p925_p13 = scmp.lt.s32.totalorder %s919_s7, %s919_s7 }
  0x1d   :  { %p926_p0 = por %p925_p13, %p924_p12 }
  0x1f   :  { %p927_p1 = pnand %p926_p0, %p920_p11 }
  0x21   :  { %930 = shalt.err (!%p927_p1)
}
  0x22   :  { %s961_s0 = smov 640   ;;  %s962_s8 = smov 40  }
  0x23   :  { %32 = dma.hbm_to_vmem [thread:$0]  %s1246_s1, 1280, %s993_s15, [#allocation6], %s961_s0, %s961_s0, %s962_s8  }
  0x24   :  { %953 = dma.done.wait [#allocation3], 80  }
  0x25   :  { %954 = vsyncadd [#allocation3], 4294967216 }
  0x26   :  { %955 = dma.done.wait [#allocation6], 1280  }
  0x27   :  { %956 = vsyncadd [#allocation6], 4294966016  ;;  %v50_v0 = vlaneseq  ;;  %v1039_v6 = vld [vmem:[#allocation2] sm:$0x1f]  ;;  %s963_s1 = smov 4   ;;  %s964_s11 = smov 3  }
  0x28   :  { %s965_s12 = smov 2   ;;  %s966_s13 = smov 1   ;;  %v93_v13 = vld [vmem:[#allocation5] ss:$8 sm:$0xf] }
  0x29   :  { %v1025_v1 = vshrl.u32 %v50_v0, 7  ;;  %s967_s14 = smov 127   ;;  %s968_s15 = smov 126   ;;  %v94_v14 = vld [vmem:[#allocation5] ss:$8 sm:$0x10] }
  0x2a   :  { %s969_s16 = smov 125   ;;  %s970_s17 = smov 124   ;;  %v1055_v15 = vand.u32 127, %v50_v0  ;;  %v95_v16 = vor.u32 %v94_v14, %v93_v13  ;;  %v971_v19 = vmov 1966171168   ;;  %vm854_vm8 = vcmp.lt.s32.totalorder %v50_v0, 640 }
  0x2b   :  { %v1028_v2 = vsub.s32 2, %v1025_v1  ;;  %v1031_v3 = vsub.s32 0, %v1025_v1  ;;  %v1034_v4 = vsub.s32 3, %v1025_v1  ;;  %v1037_v5 = vsub.s32 1, %v1025_v1  ;;  %v42_v56 = vld [vmem:[%s1247_s2] sm:$0x1f] }
  0x2c   :  { %v1050_v11 = vsub.s32 4, %v1025_v1  ;;  %v135_v20 = vunpack.c.l.s4 %v971_v19  ;;  %vm87_vm0 = vcmp.lt.s32.totalorder %v1055_v15, 4  ;;  %v44_v25 = vld [vmem:[#allocation5 + $0x4] ss:$8 sm:$0xf]  ;;  %vm183_vm1 = vcmp.lt.s32.totalorder %v1055_v15, 3 }
  0x2d   :  { %v61_v7 = vrot.slane %v1039_v6, %v1028_v2  ;;  %v53_v8 = vrot.slane %v1039_v6, %v1031_v3  ;;  %v65_v9 = vrot.slane %v1039_v6, %v1034_v4  ;;  %v57_v10 = vrot.slane %v1039_v6, %v1037_v5  ;;  %v45_v26 = vld [vmem:[#allocation5 + $0x4] ss:$8 sm:$0x10]  ;;  %v190_v31 = vld [vmem:[#allocation5 + $0x1] ss:$8 sm:$0xf] }
  0x2e   :  { %v69_v12 = vrot.slane %v1039_v6, %v1050_v11  ;;  %v112_v21 = vrot.slane %v95_v16, %v1034_v4  ;;  %v108_v22 = vrot.slane %v95_v16, %v1028_v2  ;;  %v136_v27 = vunpack.c.0.s8 %v135_v20  ;;  %v191_v32 = vld [vmem:[#allocation5 + $0x1] ss:$8 sm:$0x10]  ;;  %v288_v13 = vld [vmem:[#allocation5 + $0x2] ss:$8 sm:$0x10] }
  0x2f   :  { %79 = vrot.lane.b32.xlu1 %v61_v7, %s963_s1  ;;  %75 = vrot.lane.b32.xlu0 %v53_v8, %s963_s1  ;;  %v104_v29 = vrot.slane %v95_v16, %v1037_v5  ;;  %v100_v35 = vrot.slane %v95_v16, %v1031_v3  ;;  %v116_v36 = vrot.slane %v95_v16, %v1050_v11  ;;  %vm280_vm2 = vcmp.lt.s32.totalorder %v1055_v15, 2  ;;  %s972_s2 = smov [#allocation7]  }
  0x30   :  { %v46_v38 = vor.u32 %v45_v26, %v44_v25  ;;  %v192_v41 = vor.u32 %v191_v32, %v190_v31  ;;  %v1070_v42 = vsub.s32 %v136_v27, %v1025_v1  ;;  %vm377_vm3 = vcmp.lt.s32.totalorder %v1055_v15, 1  ;;  %s863_s20 = sshll.u32 %s972_s2, 4  ;;  %s864_s20 = int_to_ptr.vmem [resolvable:$true] %s863_s20 }
  0x31   :  { %vm474_vm4 = vcmp.lt.s32.totalorder %v1055_v15, 127  ;;  %vm571_vm5 = vcmp.lt.s32.totalorder %v1055_v15, 126  ;;  %vm668_vm6 = vcmp.lt.s32.totalorder %v1055_v15, 125  ;;  %vm765_vm7 = vcmp.lt.s32.totalorder %v1055_v15, 124  ;;  %s931_s21 = scalar_lea.vmem %s864_s20, 80  ;;  %s935_s22 = scalar_lea.vmem %s864_s20, 96 }
  0x32   :  { %v47_v49 = vmul.f32 %v46_v38, %v1039_v6  ;;  %v201_v53 = vrot.slane %v192_v41, %v1037_v5  ;;  %v205_v54 = vrot.slane %v192_v41, %v1028_v2  ;;  %v197_v58 = vrot.slane %v192_v41, %v1031_v3  ;;  %p932_p2 = scmp.ne.s32.totalorder %s864_s20, %s931_s21  ;;  %p936_p3 = scmp.lt.s32.totalorder %s864_s20, %s864_s20 }
  0x33   :  { %81 = vrot.lane.b32.xlu1 %v65_v9, %s963_s1  ;;  %77 = vrot.lane.b32.xlu0 %v57_v10, %s963_s1  ;;  %v209_v59 = vrot.slane %v192_v41, %v1034_v4  ;;  %v213_v60 = vrot.slane %v192_v41, %v1050_v11  ;;  %p937_p4 = scmp.lt.s32.totalorder %s935_s22, %s931_s21 }
  0x34   :  { %v48_v6 = vadd.f32 %v47_v49, %v42_v56 }
  0x35   :  { %p938_p5 = por %p937_p4, %p936_p3 }
  0x37   :  { %173 = vrot.lane.b32.xlu1 %v53_v8, %s964_s11  ;;  %83 = vrot.lane.b32.xlu0 %v69_v12, %s963_s1  ;;  %p939_p6 = pnand %p938_p5, %p932_p2 }
  0x3b   :  { %177 = vrot.lane.b32.xlu1 %v61_v7, %s964_s11  ;;  %175 = vrot.lane.b32.xlu0 %v57_v10, %s964_s11 }
  0x3f   :  { %181 = vrot.lane.b32.xlu1 %v69_v12, %s964_s11  ;;  %179 = vrot.lane.b32.xlu0 %v65_v9, %s964_s11 }
  0x43   :  { %272 = vrot.lane.b32.xlu1 %v57_v10, %s965_s12  ;;  %270 = vrot.lane.b32.xlu0 %v53_v8, %s965_s12 }
  0x47   :  { %276 = vrot.lane.b32.xlu1 %v65_v9, %s965_s12  ;;  %274 = vrot.lane.b32.xlu0 %v61_v7, %s965_s12 }
  0x4b   :  { %367 = vrot.lane.b32.xlu1 %v53_v8, %s966_s13  ;;  %278 = vrot.lane.b32.xlu0 %v69_v12, %s965_s12 }
  0x4f   :  { %371 = vrot.lane.b32.xlu1 %v61_v7, %s966_s13  ;;  %369 = vrot.lane.b32.xlu0 %v57_v10, %s966_s13 }
  0x53   :  { %375 = vrot.lane.b32.xlu1 %v69_v12, %s966_s13  ;;  %373 = vrot.lane.b32.xlu0 %v65_v9, %s966_s13 }
  0x57   :  { %466 = vrot.lane.b32.xlu1 %v57_v10, %s967_s14  ;;  %464 = vrot.lane.b32.xlu0 %v53_v8, %s967_s14 }
  0x5b   :  { %470 = vrot.lane.b32.xlu1 %v65_v9, %s967_s14  ;;  %468 = vrot.lane.b32.xlu0 %v61_v7, %s967_s14 }
  0x5f   :  { %561 = vrot.lane.b32.xlu1 %v53_v8, %s968_s15  ;;  %472 = vrot.lane.b32.xlu0 %v69_v12, %s967_s14 }
  0x63   :  { %565 = vrot.lane.b32.xlu1 %v61_v7, %s968_s15  ;;  %563 = vrot.lane.b32.xlu0 %v57_v10, %s968_s15 }
  0x67   :  { %569 = vrot.lane.b32.xlu1 %v69_v12, %s968_s15  ;;  %567 = vrot.lane.b32.xlu0 %v65_v9, %s968_s15 }
  0x6b   :  { %660 = vrot.lane.b32.xlu1 %v57_v10, %s969_s16  ;;  %658 = vrot.lane.b32.xlu0 %v53_v8, %s969_s16 }
  0x6f   :  { %664 = vrot.lane.b32.xlu1 %v65_v9, %s969_s16  ;;  %662 = vrot.lane.b32.xlu0 %v61_v7, %s969_s16 }
  0x73   :  { %755 = vrot.lane.b32.xlu1 %v53_v8, %s970_s17  ;;  %666 = vrot.lane.b32.xlu0 %v69_v12, %s969_s16 }
  0x77   :  { %759 = vrot.lane.b32.xlu1 %v61_v7, %s970_s17  ;;  %757 = vrot.lane.b32.xlu0 %v57_v10, %s970_s17 }
  0x7b   :  { %763 = vrot.lane.b32.xlu1 %v69_v12, %s970_s17  ;;  %761 = vrot.lane.b32.xlu0 %v65_v9, %s970_s17  ;;  %v287_v12 = vld [vmem:[#allocation5 + $0x2] ss:$8 sm:$0xf] }
  0xa1   :  { %v80_v17 = vpop.permute.xlu1 %79  ;;  %v76_v18 = vpop.permute.xlu0 %75 }
  0xa5   :  { %v82_v23 = vpop.permute.xlu1 %81  ;;  %v78_v24 = vpop.permute.xlu0 %77 }
  0xa6   :  { %v89_v28 = vsel %vm87_vm0, %v80_v17, %v82_v23  ;;  %v90_v30 = vsel %vm87_vm0, %v78_v24, %v80_v17  ;;  %v91_v37 = vsel %vm87_vm0, %v76_v18, %v78_v24 }
  0xa7   :  { %v125_v33 = vmul.f32 %v112_v21, %v89_v28  ;;  %v124_v34 = vmul.f32 %v108_v22, %v90_v30  ;;  %v123_v45 = vmul.f32 %v104_v29, %v91_v37 }
  0xa9   :  { %v174_v39 = vpop.permute.xlu1 %173  ;;  %v84_v40 = vpop.permute.xlu0 %83  ;;  %v133_v46 = vcombine.low %v124_v34, %v125_v33 }
  0xaa   :  { %v88_v43 = vsel %vm87_vm0, %v82_v23, %v84_v40  ;;  %v92_v44 = vsel %vm87_vm0, %v84_v40, %v76_v18  ;;  %v289_v23 = vor.u32 %v288_v13, %v287_v12 }
  0xab   :  { %v122_v47 = vmul.f32 %v100_v35, %v92_v44  ;;  %v126_v48 = vmul.f32 %v116_v36, %v88_v43  ;;  %v147_v61 = vrot.slane %v133_v46, %v1070_v42  ;;  %v385_v46 = vld [vmem:[#allocation5 + $0x3] ss:$8 sm:$0x10] }
  0xac   :  { %v302_v30 = vrot.slane %v289_v23, %v1028_v2  ;;  %v306_v31 = vrot.slane %v289_v23, %v1034_v4  ;;  %v298_v37 = vrot.slane %v289_v23, %v1037_v5  ;;  %v294_v43 = vrot.slane %v289_v23, %v1031_v3 }
  0xad   :  { %v132_v50 = vcombine.low %v122_v47, %v123_v45  ;;  %v154_v51 = vrot.slane %v126_v48, %v1070_v42  ;;  %v178_v52 = vpop.permute.xlu1 %177  ;;  %v176_v55 = vpop.permute.xlu0 %175  ;;  %v310_v44 = vrot.slane %v289_v23, %v1050_v11  ;;  %v384_v45 = vld [vmem:[#allocation5 + $0x3] ss:$8 sm:$0xf] }
  0xae   :  { %v187_v57 = vsel %vm183_vm1, %v174_v39, %v176_v55  ;;  %v186_v1 = vsel %vm183_vm1, %v176_v55, %v178_v52 }
  0xaf   :  { %v140_v62 = vrot.slane %v132_v50, %v1070_v42  ;;  %v169_v63 = vrot.slane %v154_v51, %v1070_v42  ;;  %v220_v8 = vmul.f32 %v201_v53, %v187_v57  ;;  %v221_v14 = vmul.f32 %v205_v54, %v186_v1 }
  0xb0   :  { %v386_v54 = vor.u32 %v385_v46, %v384_v45 }
  0xb1   :  { %v155_v7 = vcombine.low %v140_v62, %v147_v61  ;;  %v182_v9 = vpop.permute.xlu1 %181  ;;  %v180_v10 = vpop.permute.xlu0 %179 }
  0xb2   :  { %v188_v16 = vsel %vm183_vm1, %v182_v9, %v174_v39  ;;  %v184_v17 = vsel %vm183_vm1, %v180_v10, %v182_v9  ;;  %v185_v18 = vsel %vm183_vm1, %v178_v52, %v180_v10  ;;  %v391_v10 = vrot.slane %v386_v54, %v1031_v3 }
  0xb3   :  { %v162_v19 = vrot.slane %v155_v7, %v1070_v42  ;;  %v219_v20 = vmul.f32 %v197_v58, %v188_v16  ;;  %v222_v21 = vmul.f32 %v209_v59, %v185_v18  ;;  %v223_v22 = vmul.f32 %v213_v60, %v184_v17  ;;  %v482_v16 = vld [vmem:[#allocation5 + $0x5] ss:$8 sm:$0x10] }
  0xb4   :  { %v399_v7 = vrot.slane %v386_v54, %v1028_v2  ;;  %v403_v12 = vrot.slane %v386_v54, %v1034_v4  ;;  %v407_v13 = vrot.slane %v386_v54, %v1050_v11 }
  0xb5   :  { %v170_v24 = vcombine.low %v162_v19, %v169_v63  ;;  %v229_v25 = vcombine.low %v219_v20, %v220_v8  ;;  %v230_v26 = vcombine.low %v221_v14, %v222_v21  ;;  %v251_v27 = vrot.slane %v223_v22, %v1070_v42  ;;  %v273_v28 = vpop.permute.xlu1 %272  ;;  %v271_v29 = vpop.permute.xlu0 %270  ;;  %v481_v14 = vld [vmem:[#allocation5 + $0x5] ss:$8 sm:$0xf] }
  0xb6   :  { %v284_v48 = vsel %vm280_vm2, %v271_v29, %v273_v28 }
  0xb7   :  { %v172_v32 = vadd.f32 %v170_v24, %v48_v6  ;;  %v237_v33 = vrot.slane %v229_v25, %v1070_v42  ;;  %v244_v34 = vrot.slane %v230_v26, %v1070_v42  ;;  %v266_v35 = vrot.slane %v251_v27, %v1070_v42 }
  0xb8   :  { %v317_v55 = vmul.f32 %v298_v37, %v284_v48  ;;  %v395_v6 = vrot.slane %v386_v54, %v1037_v5  ;;  %v483_v25 = vor.u32 %v482_v16, %v481_v14 }
  0xb9   :  { %v252_v36 = vcombine.low %v237_v33, %v244_v34  ;;  %v277_v38 = vpop.permute.xlu1 %276  ;;  %v275_v39 = vpop.permute.xlu0 %274 }
  0xba   :  { %v282_v40 = vsel %vm280_vm2, %v275_v39, %v277_v38  ;;  %v283_v41 = vsel %vm280_vm2, %v273_v28, %v275_v39  ;;  %v496_v54 = vrot.slane %v483_v25, %v1028_v2 }
  0xbb   :  { %v259_v47 = vrot.slane %v252_v36, %v1070_v42  ;;  %v318_v49 = vmul.f32 %v302_v30, %v283_v41  ;;  %v319_v50 = vmul.f32 %v306_v31, %v282_v40  ;;  %v488_v40 = vrot.slane %v483_v25, %v1031_v3 }
  0xbc   :  { %v492_v41 = vrot.slane %v483_v25, %v1037_v5 }
  0xbd   :  { %v267_v51 = vcombine.low %v259_v47, %v266_v35  ;;  %v368_v52 = vpop.permute.xlu1 %367  ;;  %v279_v53 = vpop.permute.xlu0 %278  ;;  %v327_v59 = vcombine.low %v318_v49, %v319_v50 }
  0xbe   :  { %v281_v56 = vsel %vm280_vm2, %v277_v38, %v279_v53  ;;  %v285_v57 = vsel %vm280_vm2, %v279_v53, %v271_v29 }
  0xbf   :  { %v269_v58 = vadd.f32 %v267_v51, %v172_v32  ;;  %v316_v60 = vmul.f32 %v294_v43, %v285_v57  ;;  %v320_v61 = vmul.f32 %v310_v44, %v281_v56  ;;  %v341_v17 = vrot.slane %v327_v59, %v1070_v42  ;;  %v578_v43 = vld [vmem:[#allocation5 + $0x6] ss:$8 sm:$0xf] }
  0xc0   :  { %v579_v44 = vld [vmem:[#allocation5 + $0x6] ss:$8 sm:$0x10]  ;;  %v500_v56 = vrot.slane %v483_v25, %v1034_v4  ;;  %v504_v57 = vrot.slane %v483_v25, %v1050_v11 }
  0xc1   :  { %v326_v62 = vcombine.low %v316_v60, %v317_v55  ;;  %v348_v63 = vrot.slane %v320_v61, %v1070_v42  ;;  %v372_v1 = vpop.permute.xlu1 %371  ;;  %v370_v8 = vpop.permute.xlu0 %369  ;;  %v580_v53 = vor.u32 %v579_v44, %v578_v43 }
  0xc2   :  { %v381_v9 = vsel %vm377_vm3, %v368_v52, %v370_v8  ;;  %v380_v20 = vsel %vm377_vm3, %v370_v8, %v372_v1 }
  0xc3   :  { %v334_v18 = vrot.slane %v326_v62, %v1070_v42  ;;  %v363_v19 = vrot.slane %v348_v63, %v1070_v42  ;;  %v414_v22 = vmul.f32 %v395_v6, %v381_v9  ;;  %v415_v26 = vmul.f32 %v399_v7, %v380_v20 }
  0xc4   :  { %v585_v7 = vrot.slane %v580_v53, %v1031_v3  ;;  %v593_v25 = vrot.slane %v580_v53, %v1028_v2 }
  0xc5   :  { %v349_v21 = vcombine.low %v334_v18, %v341_v17  ;;  %v376_v23 = vpop.permute.xlu1 %375  ;;  %v374_v24 = vpop.permute.xlu0 %373 }
  0xc6   :  { %v382_v27 = vsel %vm377_vm3, %v376_v23, %v368_v52  ;;  %v378_v28 = vsel %vm377_vm3, %v374_v24, %v376_v23  ;;  %v379_v29 = vsel %vm377_vm3, %v372_v1, %v374_v24  ;;  %v601_v24 = vrot.slane %v580_v53, %v1050_v11 }
  0xc7   :  { %v356_v30 = vrot.slane %v349_v21, %v1070_v42  ;;  %v413_v31 = vmul.f32 %v391_v10, %v382_v27  ;;  %v416_v32 = vmul.f32 %v403_v12, %v379_v29  ;;  %v417_v33 = vmul.f32 %v407_v13, %v378_v28 }
  0xc8   :  { %v589_v12 = vrot.slane %v580_v53, %v1037_v5 }
  0xc9   :  { %v364_v34 = vcombine.low %v356_v30, %v363_v19  ;;  %v423_v35 = vcombine.low %v413_v31, %v414_v22  ;;  %v424_v36 = vcombine.low %v415_v26, %v416_v32  ;;  %v445_v37 = vrot.slane %v417_v33, %v1070_v42  ;;  %v467_v38 = vpop.permute.xlu1 %466  ;;  %v465_v39 = vpop.permute.xlu0 %464  ;;  %v675_v30 = vld [vmem:[#allocation5 + $0x7] ss:$8 sm:$0xf] }
  0xca   :  { %v478_v49 = vsel %vm474_vm4, %v465_v39, %v467_v38  ;;  %v676_v31 = vld [vmem:[#allocation5 + $0x7] ss:$8 sm:$0x10]  ;;  %v597_v32 = vrot.slane %v580_v53, %v1034_v4  ;;  %v773_v53 = vld [vmem:[#allocation5 + $0x28] ss:$8 sm:$0x10] }
  0xcb   :  { %v366_v45 = vadd.f32 %v364_v34, %v269_v58  ;;  %v431_v46 = vrot.slane %v423_v35, %v1070_v42  ;;  %v438_v47 = vrot.slane %v424_v36, %v1070_v42  ;;  %v460_v48 = vrot.slane %v445_v37, %v1070_v42 }
  0xcc   :  { %v510_v59 = vmul.f32 %v488_v40, %v478_v49  ;;  %v677_v40 = vor.u32 %v676_v31, %v675_v30 }
  0xcd   :  { %v446_v50 = vcombine.low %v431_v46, %v438_v47  ;;  %v471_v51 = vpop.permute.xlu1 %470  ;;  %v469_v52 = vpop.permute.xlu0 %468 }
  0xce   :  { %v477_v55 = vsel %vm474_vm4, %v467_v38, %v469_v52  ;;  %v476_v60 = vsel %vm474_vm4, %v469_v52, %v471_v51  ;;  %v772_v52 = vld [vmem:[#allocation5 + $0x28] ss:$8 sm:$0xf] }
  0xcf   :  { %v453_v58 = vrot.slane %v446_v50, %v1070_v42  ;;  %v511_v61 = vmul.f32 %v492_v41, %v477_v55  ;;  %v512_v8 = vmul.f32 %v496_v54, %v476_v60 }
  0xd1   :  { %v461_v62 = vcombine.low %v453_v58, %v460_v48  ;;  %v520_v63 = vcombine.low %v510_v59, %v511_v61  ;;  %v562_v1 = vpop.permute.xlu1 %561  ;;  %v473_v6 = vpop.permute.xlu0 %472 }
  0xd2   :  { %v475_v9 = vsel %vm474_vm4, %v471_v51, %v473_v6  ;;  %v479_v10 = vsel %vm474_vm4, %v473_v6, %v465_v39 }
  0xd3   :  { %v463_v13 = vadd.f32 %v461_v62, %v366_v45  ;;  %v528_v14 = vrot.slane %v520_v63, %v1070_v42  ;;  %v513_v16 = vmul.f32 %v500_v56, %v475_v9  ;;  %v514_v17 = vmul.f32 %v504_v57, %v479_v10 }
  0xd4   :  { %v682_v56 = vrot.slane %v677_v40, %v1031_v3  ;;  %v686_v57 = vrot.slane %v677_v40, %v1037_v5  ;;  %v774_v62 = vor.u32 %v773_v53, %v772_v52  ;;  %v694_v9 = vrot.slane %v677_v40, %v1034_v4 }
  0xd5   :  { %v521_v18 = vcombine.low %v512_v8, %v513_v16  ;;  %v542_v19 = vrot.slane %v514_v17, %v1070_v42  ;;  %v566_v20 = vpop.permute.xlu1 %565  ;;  %v564_v21 = vpop.permute.xlu0 %563  ;;  %v698_v10 = vrot.slane %v677_v40, %v1050_v11 }
  0xd6   :  { %v574_v22 = vsel %vm571_vm5, %v564_v21, %v566_v20  ;;  %v575_v23 = vsel %vm571_vm5, %v562_v1, %v564_v21  ;;  %v783_v21 = vrot.slane %v774_v62, %v1037_v5  ;;  %v795_v5 = vrot.slane %v774_v62, %v1050_v11 }
  0xd7   :  { %v535_v26 = vrot.slane %v521_v18, %v1070_v42  ;;  %v557_v27 = vrot.slane %v542_v19, %v1070_v42  ;;  %v607_v28 = vmul.f32 %v585_v7, %v575_v23  ;;  %v608_v29 = vmul.f32 %v589_v12, %v574_v22 }
  0xd8   :  { %v779_v18 = vrot.slane %v774_v62, %v1031_v3 }
  0xd9   :  { %v543_v33 = vcombine.low %v528_v14, %v535_v26  ;;  %v617_v34 = vcombine.low %v607_v28, %v608_v29  ;;  %v570_v35 = vpop.permute.xlu1 %569  ;;  %v568_v36 = vpop.permute.xlu0 %567 }
  0xda   :  { %v576_v37 = vsel %vm571_vm5, %v570_v35, %v562_v1  ;;  %v572_v38 = vsel %vm571_vm5, %v568_v36, %v570_v35  ;;  %v573_v39 = vsel %vm571_vm5, %v566_v20, %v568_v36  ;;  %v690_v1 = vrot.slane %v677_v40, %v1028_v2 }
  0xdb   :  { %v550_v41 = vrot.slane %v543_v33, %v1070_v42  ;;  %v625_v43 = vrot.slane %v617_v34, %v1070_v42  ;;  %v611_v44 = vmul.f32 %v601_v24, %v576_v37  ;;  %v609_v45 = vmul.f32 %v593_v25, %v573_v39 }
  0xdc   :  { %v610_v46 = vmul.f32 %v597_v32, %v572_v38  ;;  %v787_v33 = vrot.slane %v774_v62, %v1028_v2  ;;  %v791_v38 = vrot.slane %v774_v62, %v1034_v4 }
  0xdd   :  { %v558_v47 = vcombine.low %v550_v41, %v557_v27  ;;  %v639_v48 = vrot.slane %v611_v44, %v1070_v42  ;;  %v661_v49 = vpop.permute.xlu1 %660  ;;  %v659_v50 = vpop.permute.xlu0 %658 }
  0xde   :  { %v618_v51 = vcombine.low %v609_v45, %v610_v46  ;;  %v672_v59 = vsel %vm668_vm6, %v659_v50, %v661_v49 }
  0xdf   :  { %v560_v54 = vadd.f32 %v558_v47, %v463_v13  ;;  %v654_v55 = vrot.slane %v639_v48, %v1070_v42  ;;  %v704_v7 = vmul.f32 %v682_v56, %v672_v59 }
  0xe0   :  { %v632_v58 = vrot.slane %v618_v51, %v1070_v42 }
  0xe1   :  { %v665_v60 = vpop.permute.xlu1 %664  ;;  %v663_v61 = vpop.permute.xlu0 %662 }
  0xe2   :  { %v640_v63 = vcombine.low %v625_v43, %v632_v58  ;;  %v671_v6 = vsel %vm668_vm6, %v661_v49, %v663_v61  ;;  %v670_v13 = vsel %vm668_vm6, %v663_v61, %v665_v60 }
  0xe3   :  { %v705_v8 = vmul.f32 %v686_v57, %v671_v6  ;;  %v706_v23 = vmul.f32 %v690_v1, %v670_v13 }
  0xe4   :  { %v647_v12 = vrot.slane %v640_v63, %v1070_v42 }
  0xe5   :  { %v714_v14 = vcombine.low %v704_v7, %v705_v8  ;;  %v756_v16 = vpop.permute.xlu1 %755  ;;  %v667_v17 = vpop.permute.xlu0 %666 }
  0xe6   :  { %v669_v19 = vsel %vm668_vm6, %v665_v60, %v667_v17  ;;  %v673_v20 = vsel %vm668_vm6, %v667_v17, %v659_v50  ;;  %v655_v22 = vcombine.low %v647_v12, %v654_v55 }
  0xe7   :  { %v722_v24 = vrot.slane %v714_v14, %v1070_v42  ;;  %v707_v25 = vmul.f32 %v694_v9, %v669_v19  ;;  %v708_v26 = vmul.f32 %v698_v10, %v673_v20 }
  0xe8   :  { %v657_v27 = vadd.f32 %v655_v22, %v560_v54 }
  0xe9   :  { %v715_v28 = vcombine.low %v706_v23, %v707_v25  ;;  %v736_v29 = vrot.slane %v708_v26, %v1070_v42  ;;  %v760_v30 = vpop.permute.xlu1 %759  ;;  %v758_v3 = vpop.permute.xlu0 %757 }
  0xea   :  { %v768_v31 = vsel %vm765_vm7, %v758_v3, %v760_v30  ;;  %v769_v32 = vsel %vm765_vm7, %v756_v16, %v758_v3 }
  0xeb   :  { %v729_v34 = vrot.slane %v715_v28, %v1070_v42  ;;  %v751_v35 = vrot.slane %v736_v29, %v1070_v42  ;;  %v801_v36 = vmul.f32 %v779_v18, %v769_v32  ;;  %v802_v37 = vmul.f32 %v783_v21, %v768_v31 }
  0xed   :  { %v737_v39 = vcombine.low %v722_v24, %v729_v34  ;;  %v811_v40 = vcombine.low %v801_v36, %v802_v37  ;;  %v764_v41 = vpop.permute.xlu1 %763  ;;  %v762_v43 = vpop.permute.xlu0 %761 }
  0xee   :  { %v770_v44 = vsel %vm765_vm7, %v764_v41, %v756_v16  ;;  %v766_v11 = vsel %vm765_vm7, %v762_v43, %v764_v41  ;;  %v767_v2 = vsel %vm765_vm7, %v760_v30, %v762_v43 }
  0xef   :  { %v744_v45 = vrot.slane %v737_v39, %v1070_v42  ;;  %v819_v46 = vrot.slane %v811_v40, %v1070_v42  ;;  %v805_v47 = vmul.f32 %v795_v5, %v770_v44  ;;  %v803_v48 = vmul.f32 %v787_v33, %v767_v2 }
  0xf0   :  { %v804_v4 = vmul.f32 %v791_v38, %v766_v11 }
  0xf1   :  { %v752_v49 = vcombine.low %v744_v45, %v751_v35  ;;  %v833_v50 = vrot.slane %v805_v47, %v1070_v42 }
  0xf2   :  { %v812_v51 = vcombine.low %v803_v48, %v804_v4 }
  0xf3   :  { %v848_v52 = vrot.slane %v833_v50, %v1070_v42  ;;  %v754_v53 = vadd.f32 %v752_v49, %v657_v27 }
  0xf4   :  { %v826_v54 = vrot.slane %v812_v51, %v1070_v42 }
  0xf6   :  { %v834_v55 = vcombine.low %v819_v46, %v826_v54 }
  0xf8   :  { %v841_v15 = vrot.slane %v834_v55, %v1070_v42 }
  0xfa   :  { %v849_v56 = vcombine.low %v841_v15, %v848_v52 }
  0xfc   :  { %v851_v57 = vadd.f32 %v849_v56, %v754_v53 }
  0xfe   :  { %856 = vst.msk [vmem:[#allocation7] sm:$0x1f] %vm854_vm8, %v851_v57 }
  0xff   :  { %942 = shalt.err (!%p939_p6)
}
 0x100   :  { %s943_s25 = scalar_lea.hbm %s1248_s3, 80 }
 0x101   :  { %p944_p7 = scmp.ne.s32.totalorder %s1248_s3, %s943_s25  ;;  %p947_p8 = scmp.lt.u32.totalorder %s943_s25, %s1248_s3 }
 0x103   :  { %p949_p9 = pnand %p947_p8, %p944_p7 }
 0x105   :  { %952 = shalt.err (!%p949_p9)
}
 0x106   :  { %866 = dma.vmem_to_hbm [thread:$0]  %s864_s20, 80, %s1248_s3, [#allocation4]  }
 0x107   :  { %957 = dma.done.wait [#allocation4], 80  }
 0x108   :  { %958 = vsyncadd [#allocation4], 4294967216 }
 0x109   :  { %870 = vsyncpa [#allocation3], 1 }
 0x10a   :  { %871 = vsyncpa [#allocation6], 1 }
 0x10b   :  { %872 = vsyncpa [#allocation4], 1 }

</bundles_post_ra>
